<compile_context>
chip_gen: v5e
topology: v5e:2x2
jax: 0.10.0
libtpu: 0.0.40
codegen_flags: <defaults>
</compile_context>

<pallas_src>
import math

import jax
import jax.numpy as jnp
from jax import lax
from jax.experimental import pallas as pl
from jax.experimental.pallas import tpu as pltpu


def _make_kernel(nb, lh, c1, c2):
    """Fused conv1+relu+maxpool+conv2+relu+avgpool for one batch block."""
    m2 = nb * lh                   # pooled rows per step (batch-major, pos-minor)
    inv_lh = 1.0 / float(lh)

    def kernel(xz_ref, w1_ref, w2a_ref, w2b_ref, b2_ref, out_ref):
        # xz_ref : (m2, 4*cin+1) bf16 im2col (input rows 2j-1..2j+2, ones col)
        # w1_ref : (4*cin+1, 2*c1) bf16 -- [even taps | odd taps], bias folded
        # w2a_ref: (2*c1, c2) bf16 = [w2[0]; w2[1]]
        # w2b_ref: (2*c1, c2) bf16 = [w2[2]; 0]
        # b2_ref : (1, c2) f32
        # out_ref: (nb, 1, c2) f32
        def mm(a, b):
            return jnp.dot(a, b, preferred_element_type=jnp.float32)

        # Conv1 (both output parities in one matmul; bias via ones column).
        y = mm(xz_ref[...], w1_ref[...])                       # (m2, 2*c1) f32

        # ReLU + MaxPool1d(2): lanes [0:c1]=even, [c1:2c1]=odd.  A 64-lane XLU
        # roll lines the odd half up with the even half; one max+relu leaves
        # the pooled result duplicated in both lane halves.
        p2 = jnp.maximum(jnp.maximum(y, pltpu.roll(y, shift=c1, axis=1)), 0.0)

        # Conv2 halos: sublane rolls + per-sample boundary masks as (m2,1)
        # {0,1} f32 multiplies (cheaper than full 2-D iota compares).
        jpos = lax.broadcasted_iota(jnp.int32, (m2, 1), 0) % lh
        not_first = (jpos != 0).astype(jnp.float32)
        not_last = (jpos != lh - 1).astype(jnp.float32)
        prev2 = pltpu.roll(p2, shift=1, axis=0) * not_first       # [prev|prev]
        nxt2 = pltpu.roll(p2, shift=m2 - 1, axis=0) * not_last    # [nxt |nxt ]

        # Conv2 as 2 K=128 matmuls (vs 3 K=64).  Elementwise stays f32; only
        # MXU operands are bf16 (f32 accumulation).
        lane = lax.broadcasted_iota(jnp.int32, (m2, 2 * c1), 1)
        op_a = jnp.where(lane < c1, prev2, p2).astype(jnp.bfloat16)  # [prev|pooled]
        op_b = nxt2.astype(jnp.bfloat16)                             # [nxt|nxt]
        y2 = jnp.maximum(
            mm(op_a, w2a_ref[...]) + mm(op_b, w2b_ref[...]) + b2_ref[...],
            0.0)                                                # (m2, c2) f32

        # AdaptiveAvgPool1d(1) + Flatten: per-sample cross-sublane sum * 1/lh.
        out_ref[...] = jnp.sum(y2.reshape(nb, lh, c2), axis=1,
                               keepdims=True) * inv_lh

    return kernel


def time_series_model(x, w1, b1, w2, b2, *, max_rows=1024):
    """x: (N, C_in, L) float32 (PyTorch NCL).  Returns (N, C2) float32.

    Weights: (kernel_tap, C_in, C_out) (PyTorch Conv1d weight (C_out, C_in, k)
    transposed), biases (C,) or (1, C).
    """
    n, cin, length = x.shape
    assert length % 2 == 0, "MaxPool1d(2) path assumes even length"
    # TODO(synk): PyTorch MaxPool1d(2) floor-truncates odd L; odd lengths would
    # need a masked trailing position instead of this assert.
    lh = length // 2
    c1 = w1.shape[2]
    c2 = w2.shape[2]
    k1 = 4 * cin + 1

    # --- batch blocking ------------------------------------------------------
    # Cap rows-per-step (VMEM/spill safety on v5e and v7x's 64 MiB VMEM) and
    # use >=2 grid steps when the batch allows it (v7x megacore).
    nb = max(1, min(n, max_rows // max(lh, 1)))
    if n >= 2:
        nb = min(nb, (n + 1) // 2)
    g = 8 // math.gcd(lh, 8)          # smallest nb multiple keeping nb*lh % 8 == 0
    nb = (nb // g) * g
    if nb <= 0:
        nb = n                        # single step: full-array blocks (always legal)
    n_pad = -(-n // nb) * nb
    grid = (n_pad // nb,)
    # TODO(synk): very long L (lh > max_rows) still runs as one big row block;
    # an in-kernel fori_loop over length chunks with a 1-row halo would bound
    # VMEM for that case.

    # --- wrapper prep: ONE deduplicated im2col + folded/stacked weights ------
    f32 = jnp.float32
    x_nlc = jnp.transpose(x, (0, 2, 1)).astype(f32)               # (N, L, Cin)
    x_p = jnp.pad(x_nlc, ((0, n_pad - n), (1, 1), (0, 0)))        # (Np, L+2, Cin)
    # pooled position j consumes original rows 2j-1..2j+2 == padded 2j..2j+3
    r0 = x_p[:, 0:length:2]
    r1 = x_p[:, 1:length + 1:2]
    r2 = x_p[:, 2:length + 2:2]
    r3 = x_p[:, 3:length + 2:2]
    ones = jnp.ones((n_pad, lh, 1), f32)
    xz = jnp.concatenate([r0, r1, r2, r3, ones], -1)
    xz = xz.reshape(n_pad * lh, k1).astype(jnp.bfloat16)

    w1 = w1.astype(f32); b1 = b1.astype(f32)
    w2 = w2.astype(f32); b2 = b2.astype(f32)
    zc = jnp.zeros((cin, c1), f32)
    b1_row = b1.reshape(1, c1)
    w1_even = jnp.concatenate([w1[0], w1[1], w1[2], zc, b1_row], 0)   # (k1, c1)
    w1_odd = jnp.concatenate([zc, w1[0], w1[1], w1[2], b1_row], 0)    # (k1, c1)
    w1s = jnp.concatenate([w1_even, w1_odd], 1).astype(jnp.bfloat16)  # (k1, 2c1)

    w2a = jnp.concatenate([w2[0], w2[1]], 0).astype(jnp.bfloat16)     # (2c1, c2)
    w2b = jnp.concatenate([w2[2], jnp.zeros((c1, c2), f32)],
                          0).astype(jnp.bfloat16)                     # (2c1, c2)
    b2_row = b2.reshape(1, c2)

    kernel = _make_kernel(nb, lh, c1, c2)
    out3 = pl.pallas_call(
        kernel,
        out_shape=jax.ShapeDtypeStruct((n_pad, 1, c2), f32),
        grid=grid,
        in_specs=[
            pl.BlockSpec((nb * lh, k1), lambda i: (i, 0)),
            pl.BlockSpec((k1, 2 * c1), lambda i: (0, 0)),
            pl.BlockSpec((2 * c1, c2), lambda i: (0, 0)),
            pl.BlockSpec((2 * c1, c2), lambda i: (0, 0)),
            pl.BlockSpec((1, c2), lambda i: (0, 0)),
        ],
        out_specs=pl.BlockSpec((nb, 1, c2), lambda i: (i, 0, 0)),
        compiler_params=pltpu.CompilerParams(
            dimension_semantics=("parallel",)),
    )(xz, w1s, w2a, w2b, b2_row)
    return out3.reshape(n_pad, c2)[:n]


def reference(x, w1, b1, w2, b2):
    """Pure-JAX reference with identical semantics (sanity check)."""
    n, cin, length = x.shape
    lh = length // 2
    hi = jax.lax.Precision.HIGHEST
    x_nlc = jnp.transpose(x, (0, 2, 1))
    x_pad = jnp.pad(x_nlc, ((0, 0), (1, 1), (0, 0)))
    y1 = sum(jnp.einsum("nlc,co->nlo", x_pad[:, k:k + length, :], w1[k],
                        precision=hi) for k in range(3)) + b1.reshape(1, 1, -1)
    y1 = jnp.maximum(y1, 0.0)
    p = jnp.maximum(y1[:, 0::2, :], y1[:, 1::2, :])
    p_pad = jnp.pad(p, ((0, 0), (1, 1), (0, 0)))
    y2 = sum(jnp.einsum("nlc,co->nlo", p_pad[:, k:k + lh, :], w2[k],
                        precision=hi) for k in range(3)) + b2.reshape(1, 1, -1)
    y2 = jnp.maximum(y2, 0.0)
    return jnp.mean(y2, axis=1)


if __name__ == "__main__":
    key = jax.random.PRNGKey(0)
    kx, k1w, k1b, k2w, k2b = jax.random.split(key, 5)

    N, CIN, L = 2, 3, 16
    C1, C2 = 64, 128

    x = jax.random.normal(kx, (N, CIN, L), jnp.float32)
    w1 = jax.random.normal(k1w, (3, CIN, C1), jnp.float32) * 0.1
    b1 = jax.random.normal(k1b, (1, C1), jnp.float32) * 0.1
    w2 = jax.random.normal(k2w, (3, C1, C2), jnp.float32) * 0.05
    b2 = jax.random.normal(k2b, (1, C2), jnp.float32) * 0.1

    out = jax.block_until_ready(time_series_model(x, w1, b1, w2, b2))
    ref = jax.block_until_ready(reference(x, w1, b1, w2, b2))

    assert out.shape == (N, C2), out.shape
    err = float(jnp.max(jnp.abs(out - ref)))
    assert jnp.allclose(out, ref, rtol=1e-2, atol=1e-2), err
    print("KERNEL_OK")
</pallas_src>

<mosaic_0001>
module attributes {stable_mosaic.version = 11 : i64} {
  func.func @kernel(%arg0: i32, %arg1: memref<8x13xbf16, #tpu.memory_space<vmem>>, %arg2: memref<13x128xbf16, #tpu.memory_space<vmem>>, %arg3: memref<128x128xbf16, #tpu.memory_space<vmem>>, %arg4: memref<128x128xbf16, #tpu.memory_space<vmem>>, %arg5: memref<1x128xf32, #tpu.memory_space<vmem>>, %arg6: memref<1x1x128xf32, #tpu.memory_space<vmem>>) attributes {dimension_semantics = [#tpu.dimension_semantics<parallel>], iteration_bounds = array<i64: 2>, scalar_prefetch = 0 : i64, scratch_operands = 0 : i64, tpu.core_type = #tpu.core_type<tc>, window_params = [{transform_indices = @transform_0, window_bounds = array<i64: 8, 13>}, {pipeline_mode = #tpu.pipeline_mode<synchronous>, transform_indices = @transform_1, window_bounds = array<i64: 13, 128>}, {pipeline_mode = #tpu.pipeline_mode<synchronous>, transform_indices = @transform_2, window_bounds = array<i64: 128, 128>}, {pipeline_mode = #tpu.pipeline_mode<synchronous>, transform_indices = @transform_3, window_bounds = array<i64: 128, 128>}, {pipeline_mode = #tpu.pipeline_mode<synchronous>, transform_indices = @transform_4, window_bounds = array<i64: 1, 128>}, {transform_indices = @transform_5, window_bounds = array<i64: 1, 1, 128>}]} {
    %c0 = arith.constant 0 : index
    %c0_0 = arith.constant 0 : index
    %0 = vector.load %arg1[%c0, %c0_0] : memref<8x13xbf16, #tpu.memory_space<vmem>>, vector<8x13xbf16>
    %c0_1 = arith.constant 0 : index
    %c0_2 = arith.constant 0 : index
    %1 = vector.load %arg2[%c0_1, %c0_2] : memref<13x128xbf16, #tpu.memory_space<vmem>>, vector<13x128xbf16>
    %cst = arith.constant dense<0.000000e+00> : vector<8x128xf32>
    %2 = tpu.matmul %0, %1, %cst {dimension_numbers = #tpu.dot_dimension_numbers<[1], [0], [0], [1], [0, 0, 1, 1], [], []>} : vector<8x13xbf16>, vector<13x128xbf16>, vector<8x128xf32> -> vector<8x128xf32>
    %c64_i32 = arith.constant 64 : i32
    %3 = tpu.dynamic_rotate %2 by %c64_i32 dim 1 : vector<8x128xf32>, i32 -> vector<8x128xf32>
    %4 = arith.maximumf %2, %3 : vector<8x128xf32>
    %cst_3 = arith.constant 0.000000e+00 : f32
    %5 = vector.broadcast %cst_3 : f32 to vector<8x128xf32>
    %6 = arith.maximumf %4, %5 : vector<8x128xf32>
    %7 = tpu.iota {dimensions = array<i32: 0>} : vector<8x1xi32>
    %c8_i32 = arith.constant 8 : i32
    %c0_i32 = arith.constant 0 : i32
    %8 = arith.cmpi eq, %c8_i32, %c0_i32 : i32
    %c1_i32 = arith.constant 1 : i32
    %9 = arith.select %8, %c1_i32, %c8_i32 : i32
    %10 = vector.broadcast %9 : i32 to vector<8x1xi32>
    %11 = arith.remsi %7, %10 : vector<8x1xi32>
    %c0_i32_4 = arith.constant 0 : i32
    %12 = vector.broadcast %c0_i32_4 : i32 to vector<8x1xi32>
    %13 = arith.cmpi ne, %11, %12 : vector<8x1xi32>
    %c0_i32_5 = arith.constant 0 : i32
    %14 = vector.broadcast %c0_i32_5 : i32 to vector<8x1xi32>
    %15 = arith.cmpi slt, %11, %14 : vector<8x1xi32>
    %c0_i32_6 = arith.constant 0 : i32
    %16 = arith.cmpi slt, %9, %c0_i32_6 : i32
    %17 = vector.broadcast %16 : i1 to vector<8x1xi1>
    %18 = vector.broadcast %17 : vector<8x1xi1> to vector<8x1xi1>
    %19 = arith.xori %15, %18 : vector<8x1xi1>
    %20 = arith.andi %19, %13 : vector<8x1xi1>
    %21 = vector.broadcast %9 : i32 to vector<8x1xi32>
    %22 = arith.addi %11, %21 : vector<8x1xi32>
    %23 = arith.select %20, %22, %11 : vector<8x1xi1>, vector<8x1xi32>
    %c0_i32_7 = arith.constant 0 : i32
    %24 = vector.broadcast %c0_i32_7 : i32 to vector<8x1xi32>
    %25 = arith.cmpi ne, %23, %24 : vector<8x1xi32>
    %26 = arith.extui %25 : vector<8x1xi1> to vector<8x1xi32>
    %27 = arith.sitofp %26 : vector<8x1xi32> to vector<8x1xf32>
    %c7_i32 = arith.constant 7 : i32
    %28 = vector.broadcast %c7_i32 : i32 to vector<8x1xi32>
    %29 = arith.cmpi ne, %23, %28 : vector<8x1xi32>
    %30 = arith.extui %29 : vector<8x1xi1> to vector<8x1xi32>
    %31 = arith.sitofp %30 : vector<8x1xi32> to vector<8x1xf32>
    %c1_i32_8 = arith.constant 1 : i32
    %32 = tpu.dynamic_rotate %6 by %c1_i32_8 dim 0 : vector<8x128xf32>, i32 -> vector<8x128xf32>
    %33 = vector.broadcast %27 : vector<8x1xf32> to vector<8x128xf32>
    %34 = arith.mulf %32, %33 : vector<8x128xf32>
    %c7_i32_9 = arith.constant 7 : i32
    %35 = tpu.dynamic_rotate %6 by %c7_i32_9 dim 0 : vector<8x128xf32>, i32 -> vector<8x128xf32>
    %36 = vector.broadcast %31 : vector<8x1xf32> to vector<8x128xf32>
    %37 = arith.mulf %35, %36 : vector<8x128xf32>
    %38 = tpu.iota {dimensions = array<i32: 1>} : vector<8x128xi32>
    %c64_i32_10 = arith.constant 64 : i32
    %39 = vector.broadcast %c64_i32_10 : i32 to vector<8x128xi32>
    %40 = arith.cmpi slt, %38, %39 : vector<8x128xi32>
    %41 = arith.select %40, %34, %6 : vector<8x128xi1>, vector<8x128xf32>
    %42 = arith.truncf %41 : vector<8x128xf32> to vector<8x128xbf16>
    %43 = arith.truncf %37 : vector<8x128xf32> to vector<8x128xbf16>
    %c0_11 = arith.constant 0 : index
    %c0_12 = arith.constant 0 : index
    %44 = vector.load %arg3[%c0_11, %c0_12] : memref<128x128xbf16, #tpu.memory_space<vmem>>, vector<128x128xbf16>
    %cst_13 = arith.constant dense<0.000000e+00> : vector<8x128xf32>
    %45 = tpu.matmul %42, %44, %cst_13 {dimension_numbers = #tpu.dot_dimension_numbers<[1], [0], [0], [1], [0, 0, 1, 1], [], []>} : vector<8x128xbf16>, vector<128x128xbf16>, vector<8x128xf32> -> vector<8x128xf32>
    %c0_14 = arith.constant 0 : index
    %c0_15 = arith.constant 0 : index
    %46 = vector.load %arg4[%c0_14, %c0_15] : memref<128x128xbf16, #tpu.memory_space<vmem>>, vector<128x128xbf16>
    %cst_16 = arith.constant dense<0.000000e+00> : vector<8x128xf32>
    %47 = tpu.matmul %43, %46, %cst_16 {dimension_numbers = #tpu.dot_dimension_numbers<[1], [0], [0], [1], [0, 0, 1, 1], [], []>} : vector<8x128xbf16>, vector<128x128xbf16>, vector<8x128xf32> -> vector<8x128xf32>
    %48 = arith.addf %45, %47 : vector<8x128xf32>
    %c0_17 = arith.constant 0 : index
    %c0_18 = arith.constant 0 : index
    %49 = vector.load %arg5[%c0_17, %c0_18] : memref<1x128xf32, #tpu.memory_space<vmem>>, vector<1x128xf32>
    %50 = vector.broadcast %49 : vector<1x128xf32> to vector<8x128xf32>
    %51 = arith.addf %48, %50 : vector<8x128xf32>
    %cst_19 = arith.constant 0.000000e+00 : f32
    %52 = vector.broadcast %cst_19 : f32 to vector<8x128xf32>
    %53 = arith.maximumf %51, %52 : vector<8x128xf32>
    %54 = vector.shape_cast %53 : vector<8x128xf32> to vector<1x8x128xf32>
    %cst_20 = arith.constant dense<0.000000e+00> : vector<1x128xf32>
    %55 = vector.multi_reduction <add>, %54, %cst_20 [1] : vector<1x8x128xf32> to vector<1x128xf32>
    %56 = vector.shape_cast %55 : vector<1x128xf32> to vector<1x1x128xf32>
    %cst_21 = arith.constant 1.250000e-01 : f32
    %57 = vector.broadcast %cst_21 : f32 to vector<1x1x128xf32>
    %58 = arith.mulf %56, %57 : vector<1x1x128xf32>
    %c0_22 = arith.constant 0 : index
    %c0_23 = arith.constant 0 : index
    %c0_24 = arith.constant 0 : index
    %59 = vector.load %arg6[%c0_22, %c0_23, %c0_24] : memref<1x1x128xf32, #tpu.memory_space<vmem>>, vector<1x1x128xf32>
    tpu.vector_store %arg6[%c0_22, %c0_23, %c0_24], %58 {strides = array<i32>} : memref<1x1x128xf32, #tpu.memory_space<vmem>>, vector<1x1x128xf32>,
    return
  }
  func.func @transform_0(%arg0: i32) -> (i32, i32) {
    %c0_i32 = arith.constant 0 : i32
    %c0_i32_0 = arith.constant 0 : i32
    return %arg0, %c0_i32 : i32, i32
  }
  func.func @transform_1(%arg0: i32) -> (i32, i32) {
    %c0_i32 = arith.constant 0 : i32
    %c0_i32_0 = arith.constant 0 : i32
    %c0_i32_1 = arith.constant 0 : i32
    return %c0_i32, %c0_i32_0 : i32, i32
  }
  func.func @transform_2(%arg0: i32) -> (i32, i32) {
    %c0_i32 = arith.constant 0 : i32
    %c0_i32_0 = arith.constant 0 : i32
    %c0_i32_1 = arith.constant 0 : i32
    return %c0_i32, %c0_i32_0 : i32, i32
  }
  func.func @transform_3(%arg0: i32) -> (i32, i32) {
    %c0_i32 = arith.constant 0 : i32
    %c0_i32_0 = arith.constant 0 : i32
    %c0_i32_1 = arith.constant 0 : i32
    return %c0_i32, %c0_i32_0 : i32, i32
  }
  func.func @transform_4(%arg0: i32) -> (i32, i32) {
    %c0_i32 = arith.constant 0 : i32
    %c0_i32_0 = arith.constant 0 : i32
    %c0_i32_1 = arith.constant 0 : i32
    return %c0_i32, %c0_i32_0 : i32, i32
  }
  func.func @transform_5(%arg0: i32) -> (i32, i32, i32) {
    %c0_i32 = arith.constant 0 : i32
    %c0_i32_0 = arith.constant 0 : i32
    %c0_i32_1 = arith.constant 0 : i32
    return %arg0, %c0_i32, %c0_i32_0 : i32, i32, i32
  }
}

</mosaic_0001>

<bundles_post_ra>
// kernel: tpu_custom_call.1
= control target key start
LH: loop header
LB: loop body
LE: loop exit
PB: predicated region body
PF: predicated region fallthrough
CT: control target
= control target key end

     0   :  { %10 = vsyncpa [#allocation3], 0  ;;  %s1214_s0 = inlined_call_operand.hbm [shape: bf16[16,13], index: 0, kind: input, shape index: {}]   ;;  %s1215_s1 = inlined_call_operand.hbm [shape: bf16[13,128], index: 1, kind: input, shape index: {}]   ;;  %s1216_s2 = inlined_call_operand.hbm [shape: bf16[128,128], index: 2, kind: input, shape index: {}]   ;;  %s1217_s3 = inlined_call_operand.hbm [shape: bf16[128,128], index: 3, kind: input, shape index: {}]   ;;  %s1218_s4 = inlined_call_operand.vmem [shape: f32[1,128], index: 4, kind: input, shape index: {}]   ;;  %s1219_s5 = inlined_call_operand.hbm [shape: f32[2,1,128], index: 5, kind: output, shape index: {}]  }
   0x1   :  { %12 = vsyncpa [#allocation3 + $0x1], 0 }
   0x2   :  { %13 = vsyncpa [#allocation6], 0 }
   0x3   :  { %14 = vsyncpa [#allocation9], 0 }
   0x4   :  { %15 = vsyncpa [#allocation4], 0 }
   0x5   :  { %17 = vsyncpa [#allocation4 + $0x1], 0  ;;  %s1054_s18 = smov 0   ;;  %s1056_s19 = smov 0  }
   0x6   :  { %s1058_s20 = smov 0   ;;  %s1060_s21 = smov 0  }
   0x7 LB: > { %s175_s24 = sshll.u32 %s1215_s1, 4  ;;  %s1078_s25 = sadd.s32 4294967295, %s1014_s21   ;;  %s1014_s21 = sphi %s1060_s21, %s1230_s21   ;;  %s1010_s20 = sphi %s1058_s20, %s1229_s20   ;;  %s1006_s19 = sphi %s1056_s19, %s1228_s19   ;;  %s1002_s18 = sphi %s1054_s18, %s1227_s18   ;;  %s176_s24 = int_to_ptr.hbm [resolvable:$true] %s175_s24 }
   0x8   : > { %p635_p0 = scmp.ge.s32.totalorder %s1014_s21, 1  ;;  %p44_p1 = scmp.eq.s32.totalorder %s1078_s25, 0 }
   0x9   : > { %p164_p2 = scmp.lt.s32.totalorder %s1014_s21, 3  ;;  %s1016_s27 = smov [#allocation5]  }
   0xa   : > { %s177_s28 = sshll.u32 %s1016_s27, 4  ;;  %s189_s6 = sshll.u32 %s1216_s2, 4  ;;  %s178_s28 = int_to_ptr.vmem [resolvable:$true] %s177_s28  ;;  %s190_s6 = int_to_ptr.hbm [resolvable:$true] %s189_s6 }
   0xb   : > { %p1083_p3 = pnand %p635_p0, %p164_p2  ;;  %s203_s10 = sshll.u32 %s1217_s3, 4  ;;  %s204_s10 = int_to_ptr.hbm [resolvable:$true] %s203_s10 }
   0xc   : > { %s1017_s11 = smov [#allocation7]   ;;  %s1018_s13 = smov 64  }
   0xd   : > { %p753_p4 = pneg %p1083_p3  ;;  %s191_s12 = sshll.u32 %s1017_s11, 4  ;;  %s192_s12 = int_to_ptr.vmem [resolvable:$true] %s191_s12 }
   0xe   : > { %s1019_s14 = smov 4   ;;  %s1020_s15 = smov [#allocation8]  }
   0xf   : > { %p1095_p6 = pnand %p753_p4, %p44_p1  ;;  %s205_s16 = sshll.u32 %s1020_s15, 4  ;;  %s206_s16 = int_to_ptr.vmem [resolvable:$true] %s205_s16 }
  0x10   : > { %s634_s17 = sadd.s32 4294967294, %s1014_s21   ;;  %s1110_s22 = sadd.s32 1, %s1014_s21  }
  0x11   : > { %756 = dma.hbm_to_vmem [thread:$0]  (!%p1095_p6), %s176_s24, 128, %s178_s28, [#allocation6], %s1018_s13, %s1018_s13, %s1019_s14  }
  0x12   : > { %759 = dma.hbm_to_vmem [thread:$0]  (!%p1095_p6), %s190_s6, 1024, %s192_s12, [#allocation6], %s1018_s13, %s1018_s13, %s1019_s14  }
  0x13   : > { %762 = dma.hbm_to_vmem [thread:$0]  (!%p1095_p6), %s204_s10, 1024, %s206_s16, [#allocation9], %s1018_s13, %s1018_s13, %s1019_s14  }
  0x14   : > { %s30_s23 = sadd.s32 1, %s1010_s20  ;;  %s27_s24 = ssub.s32 %s1014_s21, %s1110_s22 }
  0x15   : > { %p37_p7 = scmp.ne.s32.totalorder %s1010_s20, %s1006_s19  ;;  %p28_p8 = scmp.eq.s32.totalorder %s27_s24, 0 }
  0x16   : > { %p38_p9 = scmp.eq.s32.totalorder %s1014_s21, 0  ;;  %p43_p10 = scmp.ne.s32.totalorder %s1006_s19, %s1002_s18 }
  0x17   : > { %p151_p11 = scmp.eq.s32.totalorder %s1078_s25, 1  ;;  %p157_p0 = scmp.eq.s32.totalorder %s634_s17, 1 }
  0x18   : > { %s1122_s27 = scalar_select %p28_p8, %s1010_s20, %s30_s23  }
  0x19   : > { %p1126_p12 = por %p44_p1, %p43_p10  ;;  %p1130_p13 = por %p151_p11, %p37_p7 }
  0x1a   : > { %p39_p2 = por %p38_p9, %p37_p7  ;;  %s222_s30 = sand.u32 1, %s1010_s20  }
  0x1b   : > { %p1135_p4 = por %p157_p0, %p43_p10  ;;  %p774_p6 = scmp.lt.s32.totalorder %s1014_s21, 2 }
  0x1c   : > { %s640_s7 = sshll.u32 %s222_s30, 2  ;;  %s641_s8 = sshll.u32 %s1014_s21, 2 }
  0x1d   : > { %s230_s11 = scalar_lea.hbm %s1214_s0, %s641_s8  ;;  %s226_s13 = scalar_lea.vmem [#allocation2], %s640_s7 }
  0x1e   : > { %s232_s12 = sshll.u32 %s230_s11, 4  ;;  %s234_s14 = sshll.u32 %s226_s13, 4  ;;  %s233_s12 = int_to_ptr.hbm [resolvable:$true] %s232_s12  ;;  %s235_s14 = int_to_ptr.vmem [resolvable:$true] %s234_s14 }
  0x1f   : > { %p1144_p8 = pnand %p774_p6, %p39_p2  ;;  %s223_s16 = scalar_lea.sflag [#allocation3], %s222_s30 }
  0x20   : > { %s910_s17 = sshra.s32 %s233_s12, 4  ;;  %s917_s7 = scalar_lea.hbm %s1214_s0, 8  ;;  %s911_s17 = int_to_ptr.hbm [resolvable:$true] %s910_s17 }
  0x21   : > { %s912_s23 = scalar_lea.hbm %s911_s17, 4  ;;  %p914_p9 = pneg %p1144_p8 }
  0x22   : > { %p913_p7 = scmp.ne.s32.totalorder %s911_s17, %s912_s23  ;;  %p918_p0 = scmp.lt.s32.totalorder %s911_s17, %s1214_s0 }
  0x23   : > { %p919_p2 = scmp.lt.s32.totalorder %s917_s7, %s912_s23 }
  0x24   : > { %p915_p10 = pnand %p914_p9, %p913_p7 }
  0x25   : > { %p920_p6 = por %p919_p2, %p918_p0 }
  0x26   : > { %p916_p11 = pneg %p915_p10 }
  0x28   : > { %p921_p5 = pnand %p920_p6, %p916_p11 }
  0x2a   : > { %924 = shalt.err (!%p921_p5)
}
  0x2b   : > { %766 = dma.hbm_to_vmem [thread:$0]  (!%p1144_p8), %s233_s12, 64, %s235_s14, %s223_s16  }
  0x2c   : > { %243 = sbr.rel (%p1083_p3) target bundleno = 470 (0x1d6), region = 40  ;;  %s1161_s30 = sand.u32 (!%p1083_p3), 1, %s1006_s19  }
  0x2d   : > { %s643_s11 = sshll.u32 (!%p1083_p3), %s1161_s30, 2  ;;  %s246_s13 = scalar_lea.sflag (!%p1083_p3), [#allocation3], %s1161_s30 }
  0x2e   : > { %s249_s24 = scalar_lea.vmem (!%p1083_p3), [#allocation2], %s643_s11 }
  0x31   : > { %985 = dma.done.wait (%p1126_p12), %s246_s13, 64  }
  0x32   : > { %987 = vsyncadd (%p1126_p12), %s246_s13, 4294967232 }
  0x33   : > { %989 = dma.done.wait (%p44_p1), [#allocation6], 1152  }
  0x34   : > { %991 = vsyncadd (%p44_p1), [#allocation6], 4294966144 }
  0x35   : > { %993 = dma.done.wait (%p44_p1), [#allocation9], 1024  }
  0x36   : > { %995 = vsyncadd (%p44_p1), [#allocation9], 4294966272  ;;  %vm304_vm0 = vcmask 1045504   ;;  %vm305_vm1 = vcmask 1046528   ;;  %v1021_v0 = vmov 65535   ;;  %vm300_vm2 = vcmask 105472   ;;  %s535_s16 = scalar_lea.hbm %s1219_s5, %s1078_s25 }
  0x37   : > { %v306_v1 = vsel %vm304_vm0, 4294967295, %v1021_v0  ;;  %v649_v2 = vld [vmem:[#allocation5] sm:$0xf]  ;;  %v720_v3 = vld [vmem:[#allocation5] sm:$0x70]  ;;  %v735_v10 = vld [vmem:[#allocation8 + $0x30] sm:$0xff]  ;;  %v328_v26 = vlaneseq }
  0x38   : > { %v307_v4 = vsel %vm305_vm1, %v306_v1, 0  ;;  %v650_v5 = vor.u32 %v720_v3, %v649_v2  ;;  %v292_v7 = vld [vmem:[%s249_s24] sm:$0xf]  ;;  %v736_v8 = vld [vmem:[#allocation8 + $0x38] sm:$0xff]  ;;  %v734_v12 = vld [vmem:[#allocation8 + $0x28] sm:$0xff]  ;;  %s1022_s26 = smov 64  }
  0x39   : > { %v728_v9 = vld [vmem:[#allocation7 + $0x38] sm:$0xff]  ;;  %438 = vmatpush.bf16.msra.mxu1 %v736_v8  ;;  %v727_v11 = vld [vmem:[#allocation7 + $0x30] sm:$0xff]  ;;  %v726_v13 = vld [vmem:[#allocation7 + $0x28] sm:$0xff]  ;;  %v329_v27 = vshrl.u32 %v328_v26, 7  ;;  %v353_v31 = vand.u32 127, %v328_v26  ;;  %v1023_v33 = vmov 0.0  }
  0x3a   : > { %v309_v6 = vand.u32 %v650_v5, %v307_v4  ;;  %499 = vmatpush.bf16.msra.mxu2 %v728_v9  ;;  %v733_v14 = vld [vmem:[#allocation8 + $0x20] sm:$0xff]  ;;  %v732_v16 = vld [vmem:[#allocation8 + $0x18] sm:$0xff]  ;;  %v731_v20 = vld [vmem:[#allocation8 + $0x10] sm:$0xff]  ;;  %s290_s17 = scalar_lea.vmem [#allocation10], %s1161_s30  ;;  %s539_s8 = sshll.u32 %s535_s16, 4  ;;  %s540_s8 = int_to_ptr.hbm [resolvable:$true] %s539_s8 }
  0x3b   : > { %v725_v15 = vld [vmem:[#allocation7 + $0x20] sm:$0xff]  ;;  %v724_v17 = vld [vmem:[#allocation7 + $0x18] sm:$0xff]  ;;  %v723_v21 = vld [vmem:[#allocation7 + $0x10] sm:$0xff]  ;;  %v334_v28 = vand.u32 7, %v329_v27  ;;  %vm354_vm5 = vcmp.lt.s32.totalorder %v353_v31, 64  ;;  %s537_s23 = sshll.u32 %s290_s17, 4  ;;  %s538_s23 = int_to_ptr.vmem [resolvable:$true] %s537_s23 }
  0x3c   : > { %318 = vmatpush.bf16.msra.mxu0 %v309_v6  ;;  %v730_v22 = vld [vmem:[#allocation8 + $0x8] sm:$0xff]  ;;  %v729_v24 = vld [vmem:[#allocation8] sm:$0xff]  ;;  %v819_v44 = vld [vmem:[%s1218_s4] ss:$0 sm:$0xff]  ;;  %s527_s7 = scalar_lea.sflag [#allocation4], %s1161_s30  ;;  %s954_s9 = sshra.s32 %s540_s8, 4  ;;  %s955_s9 = int_to_ptr.hbm [resolvable:$true] %s954_s9 }
  0x3d   : > { %439 = vmatpush.bf16.msra.mxu1 %v735_v10  ;;  %v722_v23 = vld [vmem:[#allocation7 + $0x8] sm:$0xff]  ;;  %v721_v25 = vld [vmem:[#allocation7] sm:$0xff]  ;;  %vm342_vm3 = vcmp.ne.s32.totalorder %v334_v28, 0  ;;  %vm345_vm4 = vcmp.ne.s32.totalorder %v334_v28, 7  ;;  %s956_s10 = scalar_lea.hbm %s955_s9, 1  ;;  %s960_s25 = scalar_lea.hbm %s1219_s5, 2 }
  0x3e   : > { %500 = vmatpush.bf16.msra.mxu2 %v727_v11  ;;  %v652_v34 = vsel %vm342_vm3, 1.0, %v1023_v33  ;;  %v653_v35 = vsel %vm345_vm4, 1.0, %v1023_v33  ;;  %p957_p1 = scmp.ne.s32.totalorder %s955_s9, %s956_s10  ;;  %p961_p12 = scmp.lt.s32.totalorder %s955_s9, %s1219_s5 }
  0x3f   : > { %651 = vmatmul.msk.bf16.vlgmr.msra.gmra.mxu0 %vm300_vm2, %v292_v7  ;;  %p962_p8 = scmp.lt.s32.totalorder %s960_s25, %s956_s10 }
  0x40   : > { %p958_p3 = pnand %p957_p1, %p1130_p13 }
  0x41   : > { %440 = vmatpush.bf16.msra.mxu1 %v734_v12  ;;  %p963_p7 = por %p962_p8, %p961_p12 }
  0x42   : > { %501 = vmatpush.bf16.msra.mxu2 %v726_v13  ;;  %p959_p5 = pneg %p958_p3 }
  0x44   : > { %p964_p9 = pnand %p963_p7, %p959_p5 }
  0x45   : > { %441 = vmatpush.bf16.msra.mxu1 %v733_v14 }
  0x46   : > { %502 = vmatpush.bf16.msra.mxu2 %v725_v15 }
  0x49   : > { %442 = vmatpush.bf16.msra.mxu1 %v732_v16 }
  0x4a   : > { %503 = vmatpush.bf16.msra.mxu2 %v724_v17 }
  0x4d   : > { %443 = vmatpush.bf16.msra.mxu1 %v731_v20 }
  0x4e   : > { %504 = vmatpush.bf16.msra.mxu2 %v723_v21 }
  0x51   : > { %444 = vmatpush.bf16.msra.mxu1 %v730_v22 }
  0x52   : > { %505 = vmatpush.bf16.msra.mxu2 %v722_v23 }
  0x55   : > { %445 = vmatpush.bf16.msra.mxu1 %v729_v24 }
  0x56   : > { %506 = vmatpush.bf16.msra.mxu2 %v721_v25 }
  0xbc   : > { %v320_v18 = vpop.f32.mrf.mxu0 }
  0xbd   : > { %324 = vrot.lane.b32.xlu0 %v320_v18, %s1022_s26 }
  0xc4   : > { %v322_v19 = vpop.f32.mrf.mxu0 }
 0x12f   : > { %v325_v29 = vpop.permute.xlu0 %324 }
 0x130   : > { %v326_v30 = vmax.f32 %v320_v18, %v325_v29 }
 0x132   : > { %v327_v32 = vmax.f32 %v326_v30, 0.0 }
 0x134   : > { %v348_v36 = vrot.slane %v327_v32, 7  ;;  %v350_v37 = vrot.slane %v327_v32, 1 }
 0x136   : > { %v349_v38 = vmul.f32 %v652_v34, %v348_v36  ;;  %v351_v39 = vmul.f32 %v653_v35, %v350_v37 }
 0x138   : > { %v357_v40 = vpack.c.bf16 %v351_v39, %v351_v39  ;;  %v355_v41 = vsel %vm354_vm5, %v349_v38, %v327_v32 }
 0x139   : > { %v356_v42 = vpack.c.bf16 %v355_v41, %v355_v41 }
 0x13a   : > { %446 = vmatmul.bf16.vlgmr.msra.gmra.mxu1 %v357_v40 }
 0x13b   : > { %507 = vmatmul.bf16.vlgmr.msra.gmra.mxu2 %v356_v42 }
 0x1b7   : > { %v447_v43 = vpop.f32.mrf.mxu1 }
 0x1be   : > { %v508_v45 = vpop.f32.mrf.mxu2 }
 0x1bf   : > { %v509_v46 = vadd.f32 %v508_v45, %v447_v43  ;;  %v449_v47 = vpop.f32.mrf.mxu1 }
 0x1c1   : > { %v516_v48 = vadd.f32 %v819_v44, %v509_v46 }
 0x1c3   : > { %v517_v49 = vmax.f32 %v516_v48, 0.0 }
 0x1c5   : > { %v518_v50 = vrot.slane %v517_v49, 4 }
 0x1c6   : > { %v510_v51 = vpop.f32.mrf.mxu2 }
 0x1c7   : > { %v519_v52 = vadd.f32 %v518_v50, %v517_v49 }
 0x1c9   : > { %v520_v53 = vrot.slane %v519_v52, 2 }
 0x1cb   : > { %v521_v54 = vadd.f32 %v520_v53, %v519_v52 }
 0x1cd   : > { %v522_v55 = vrot.slane %v521_v54, 1 }
 0x1cf   : > { %v523_v56 = vadd.f32 %v522_v55, %v521_v54 }
 0x1d1   : > { %v524_v57 = vmul.f32 0.125, %v523_v56 }
 0x1d3   : > { %525 = vst [vmem:[%s290_s17] sm:$0x1] %v524_v57 }
 0x1d4   : > { %967 = shalt.err (!%p964_p9)
}
 0x1d5   : > { %751 = dma.vmem_to_hbm [thread:$0]  (%p1130_p13), %s538_s23, 16, %s540_s8, %s527_s7  }
 0x1d6 PF: > { %s551_s30 = sand.u32 1, %s1002_s18   ;;  %p1226_p10 = scmp.ge.s32.totalorder %s1014_s21, 2 }
 0x1d7   : > { %s552_s28 = scalar_lea.sflag [#allocation4], %s551_s30 }
 0x1d8   : > { %p768_p11 = pnand %p1226_p10, %p1135_p4 }
 0x1da   : > { %p769_p0 = pneg %p768_p11 }
 0x1dc   : > { %997 = dma.done.wait (%p769_p0), %s552_s28, 16  }
 0x1dd   : > { %999 = vsyncadd (%p769_p0), %s552_s28, 4294967280  ;;  %p20_p2 = scmp.ge.s32.totalorder %s1110_s22, 4   ;;  %s1227_s18 = smov %s1006_s19 }
 0x1de   : > { %s1228_s19 = smov %s1010_s20  ;;  %s1229_s20 = smov %s1122_s27 }
 0x1df   : > { %s1230_s21 = smov %s1110_s22  ;;  %22 = sbr.rel (!%p20_p2) target bundleno = 7 (0x7), region = 97 }
 0x1e4   :  { %557 = vsyncpa [#allocation3], 1 }
 0x1e5   :  { %559 = vsyncpa [#allocation3 + $0x1], 1 }
 0x1e6   :  { %560 = vsyncpa [#allocation6], 1 }
 0x1e7   :  { %561 = vsyncpa [#allocation9], 1 }
 0x1e8   :  { %562 = vsyncpa [#allocation4], 1 }
 0x1e9   :  { %564 = vsyncpa [#allocation4 + $0x1], 1 }

</bundles_post_ra>
